<compile_context>
chip_gen: v5e
topology: v5e:2x2
jax: 0.10.0
libtpu: 0.0.40
codegen_flags: <defaults>
</compile_context>

<pallas_src>
import jax
import jax.numpy as jnp
from jax.experimental import pallas as pl
from jax.experimental.pallas import tpu as pltpu


def _lm_criterion_kernel(logp_ref, tgt_ref, mask_ref, out_ref, row_acc):
    """Grid = (row_tiles [parallel], vocab_tiles [arbitrary])."""
    j = pl.program_id(1)
    tile_v = logp_ref.shape[1]

    @pl.when(j == 0)
    def _():
        row_acc[...] = jnp.zeros_like(row_acc)

    logp = logp_ref[...]                                    # native dtype (bf16 ok)
    # Local column index of the target within this vocab tile.  Sentinel (-1)
    # targets of padded rows and any garbage lanes of partial blocks can never
    # satisfy the equality (valid targets are always < V).
    tgt_local = tgt_ref[...] - j * tile_v                   # (Tm, 1) int32
    col = jax.lax.broadcasted_iota(jnp.int32, logp.shape, 1)
    hit = col == tgt_local                                  # (Tm, Tv) one-hot
    # Select in the input dtype (exact: all non-selected addends are 0.0),
    # reduce across this vocab tile, cast only the (Tm, 1) partial to f32.
    masked = jnp.where(hit, logp, jnp.zeros_like(logp))
    row_acc[...] += jnp.sum(masked, axis=1, keepdims=True).astype(jnp.float32)

    @pl.when(j == pl.num_programs(1) - 1)
    def _():
        mask = mask_ref[...]                                # (Tm, 1) f32
        partial = jnp.sum(-row_acc[...] * mask)             # scalar per row tile
        # Lane-dense (8, 128) store of the partial numerator for this row tile.
        out_ref[...] = jnp.broadcast_to(partial, out_ref.shape)


def _round_up(a, b):
    return (a + b - 1) // b * b


def language_model_criterion(logits, target, mask, *,
                             tile_v_cap=2048,
                             block_budget_bytes=None):
    """logits: (B, S, V) float log-probs (f32 or bf16); target: (B, S) int;
    mask: (B, S) float.  Returns the masked mean NLL (scalar, f32)."""
    B, S, V = logits.shape
    N = B * S
    itemsize = jnp.dtype(logits.dtype).itemsize

    # ---- generation-aware budgets -----------------------------------------
    try:
        vmem_cap = int(pltpu.get_tpu_info().vmem_capacity_bytes)
    except Exception:
        vmem_cap = 64 * 1024 * 1024           # conservative (v7x) fallback
    if block_budget_bytes is None:
        # single-buffer streamed logp block; x2 for double-buffering below.
        block_budget_bytes = min(8 * 1024 * 1024, vmem_cap // 6)

    # ---- vocab tile: multiple of 128 lanes, never wider than V ------------
    if V >= 128:
        tile_v = min(int(tile_v_cap), (V // 128) * 128)
        tile_v = max(128, (tile_v // 128) * 128)
    else:
        tile_v = V                            # block equals the full array dim

    # ---- row tile: sized from the VMEM budget, multiple of 8 --------------
    tile_m = block_budget_bytes // (tile_v * itemsize)
    tile_m = max(8, min(2048, (tile_m // 8) * 8))
    # keep >= ~4 row tiles so the "parallel" axis can split across TensorCores
    tile_m = min(tile_m, max(8, ((pl.cdiv(N, 4) + 7) // 8) * 8))
    # never let the block exceed the array dim
    if N >= 8:
        tile_m = min(tile_m, (N // 8) * 8)
    else:
        tile_m = N

    n_row_tiles = pl.cdiv(N, tile_m)
    n_voc_tiles = pl.cdiv(V, tile_v)

    # ---- flatten; pad ONLY the tiny (N, 1) side inputs ---------------------
    logp2d = logits.reshape(N, V)             # metadata-only reshape, no HBM copy
    tgt2d = target.reshape(N, 1).astype(jnp.int32)
    mask2d = mask.reshape(N, 1).astype(jnp.float32)
    N_pad = n_row_tiles * tile_m
    if N_pad != N:
        # sentinel target -1: never matches any column; mask 0: no contribution
        tgt2d = jnp.pad(tgt2d, ((0, N_pad - N), (0, 0)), constant_values=-1)
        mask2d = jnp.pad(mask2d, ((0, N_pad - N), (0, 0)))

    # ---- explicit VMEM limit: 2x logp block + lane-padded small buffers ----
    logp_block_bytes = tile_m * tile_v * itemsize
    # tgt/mask blocks (double-buffered) + row_acc scratch: (tile_m, 1) pads to
    # 128 lanes; out block (8,128) double-buffered.
    small_bytes = (2 * 2 + 1) * tile_m * 128 * 4 + 2 * 8 * 128 * 4
    vmem_limit = max(32 * 1024 * 1024,
                     2 * logp_block_bytes + small_bytes + (4 << 20))
    vmem_limit = min(vmem_limit, int(vmem_cap * 0.85))

    partials = pl.pallas_call(
        _lm_criterion_kernel,
        out_shape=jax.ShapeDtypeStruct((n_row_tiles * 8, 128), jnp.float32),
        grid_spec=pltpu.PrefetchScalarGridSpec(
            num_scalar_prefetch=0,
            grid=(n_row_tiles, n_voc_tiles),
            in_specs=[
                pl.BlockSpec((tile_m, tile_v), lambda i, j: (i, j)),
                pl.BlockSpec((tile_m, 1), lambda i, j: (i, 0)),  # DMA once per row tile
                pl.BlockSpec((tile_m, 1), lambda i, j: (i, 0)),
            ],
            out_specs=pl.BlockSpec((8, 128), lambda i, j: (i, 0)),
            scratch_shapes=[pltpu.VMEM((tile_m, 1), jnp.float32)],
        ),
        compiler_params=pltpu.CompilerParams(
            dimension_semantics=("parallel", "arbitrary"),
            vmem_limit_bytes=int(vmem_limit),
        ),
    )(logp2d, tgt2d, mask2d)

    # Tiny final reduction + division in plain JAX.
    numerator = jnp.sum(partials[::8, 0])
    denominator = jnp.sum(mask.astype(jnp.float32))
    # Note: like the PyTorch module, sum(mask) == 0 yields NaN/Inf.
    return numerator / denominator


def _reference(logits, target, mask):
    B, S, V = logits.shape
    lp = logits.reshape(-1, V).astype(jnp.float32)
    tg = target.reshape(-1)
    mk = mask.reshape(-1).astype(jnp.float32)
    gathered = jnp.take_along_axis(lp, tg[:, None], axis=1)[:, 0]
    return jnp.sum(-gathered * mk) / jnp.sum(mk)


def _make_inputs(key, B, S, V, dtype=jnp.float32):
    k1, k2, k3 = jax.random.split(key, 3)
    raw = jax.random.normal(k1, (B, S, V), dtype=jnp.float32)
    logits = jax.nn.log_softmax(raw, axis=-1).astype(dtype)
    target = jax.random.randint(k2, (B, S), 0, V, dtype=jnp.int32)
    mask = (jax.random.uniform(k3, (B, S)) > 0.25).astype(jnp.float32)
    mask = mask.at[0, 0].set(1.0)                 # ensure sum(mask) > 0
    return logits, target, mask


if __name__ == "__main__":
    key = jax.random.PRNGKey(0)
    kA, kB = jax.random.split(key)

    # Case 1: B=2, S=9, V=384 -> partial last row block (N=18), single vocab tile.
    logits, target, mask = _make_inputs(kA, 2, 9, 384)
    ref = _reference(logits, target, mask)

    out_default = jax.block_until_ready(
        language_model_criterion(logits, target, mask))
    assert jnp.allclose(out_default, ref, rtol=1e-5, atol=1e-5), (out_default, ref)

    # Case 2: force multiple vocab tiles (tile_v=128 -> 3 vocab tiles).
    out_tiled = jax.block_until_ready(
        language_model_criterion(logits, target, mask, tile_v_cap=128))
    assert jnp.allclose(out_tiled, ref, rtol=1e-5, atol=1e-5), (out_tiled, ref)

    # Case 3: V not a multiple of 128 -> partial last vocab block (V=200, 2 tiles).
    logits2, target2, mask2 = _make_inputs(kB, 2, 9, 200)
    ref2 = _reference(logits2, target2, mask2)
    out2 = jax.block_until_ready(
        language_model_criterion(logits2, target2, mask2, tile_v_cap=128))
    assert jnp.allclose(out2, ref2, rtol=1e-5, atol=1e-5), (out2, ref2)

    # Case 4: bf16 log-probs stream untouched (f32 reference, loose tolerance).
    logits_bf = logits.astype(jnp.bfloat16)
    out_bf = jax.block_until_ready(
        language_model_criterion(logits_bf, target, mask))
    assert jnp.allclose(out_bf, ref, rtol=2e-2, atol=2e-2), (out_bf, ref)

    print("KERNEL_OK")
</pallas_src>

<mosaic_0001>
module attributes {stable_mosaic.version = 11 : i64} {
  func.func @_lm_criterion_kernel(%arg0: i32, %arg1: i32, %arg2: memref<8x384xf32, #tpu.memory_space<vmem>>, %arg3: memref<8x1xi32, #tpu.memory_space<vmem>>, %arg4: memref<8x1xf32, #tpu.memory_space<vmem>>, %arg5: memref<8x128xf32, #tpu.memory_space<vmem>>, %arg6: memref<8x1xf32, #tpu.memory_space<vmem>>) attributes {dimension_semantics = [#tpu.dimension_semantics<parallel>, #tpu.dimension_semantics<arbitrary>], iteration_bounds = array<i64: 3, 1>, scalar_prefetch = 0 : i64, scratch_operands = 1 : i64, tpu.core_type = #tpu.core_type<tc>, window_params = [{transform_indices = @transform_0, window_bounds = array<i64: 8, 384>}, {transform_indices = @transform_1, window_bounds = array<i64: 8, 1>}, {transform_indices = @transform_2, window_bounds = array<i64: 8, 1>}, {transform_indices = @transform_3, window_bounds = array<i64: 8, 128>}]} {
    %c0_i32 = arith.constant 0 : i32
    %0 = arith.cmpi eq, %arg1, %c0_i32 : i32
    %1 = arith.extui %0 : i1 to i32
    %c0_i32_0 = arith.constant 0 : i32
    %2 = arith.cmpi ne, %1, %c0_i32_0 : i32
    scf.if %2 {
      %cst_11 = arith.constant 0.000000e+00 : f32
      %21 = vector.broadcast %cst_11 : f32 to vector<8x1xf32>
      %c0_12 = arith.constant 0 : index
      %c0_13 = arith.constant 0 : index
      %22 = vector.load %arg6[%c0_12, %c0_13] : memref<8x1xf32, #tpu.memory_space<vmem>>, vector<8x1xf32>
      tpu.vector_store %arg6[%c0_12, %c0_13], %21 {strides = array<i32>} : memref<8x1xf32, #tpu.memory_space<vmem>>, vector<8x1xf32>,
    } else {
    }
    %c0 = arith.constant 0 : index
    %c0_1 = arith.constant 0 : index
    %3 = vector.load %arg2[%c0, %c0_1] : memref<8x384xf32, #tpu.memory_space<vmem>>, vector<8x384xf32>
    %c0_2 = arith.constant 0 : index
    %c0_3 = arith.constant 0 : index
    %4 = vector.load %arg3[%c0_2, %c0_3] : memref<8x1xi32, #tpu.memory_space<vmem>>, vector<8x1xi32>
    %c384_i32 = arith.constant 384 : i32
    %5 = arith.muli %arg1, %c384_i32 : i32
    %6 = vector.broadcast %5 : i32 to vector<8x1xi32>
    %7 = arith.subi %4, %6 : vector<8x1xi32>
    %8 = tpu.iota {dimensions = array<i32: 1>} : vector<8x384xi32>
    %9 = vector.broadcast %7 : vector<8x1xi32> to vector<8x384xi32>
    %10 = arith.cmpi eq, %8, %9 : vector<8x384xi32>
    %cst = arith.constant 0.000000e+00 : f32
    %11 = vector.broadcast %cst : f32 to vector<8x384xf32>
    %12 = arith.select %10, %3, %11 : vector<8x384xi1>, vector<8x384xf32>
    %c0_4 = arith.constant 0 : index
    %c0_5 = arith.constant 0 : index
    %13 = vector.load %arg6[%c0_4, %c0_5] : memref<8x1xf32, #tpu.memory_space<vmem>>, vector<8x1xf32>
    %cst_6 = arith.constant dense<0.000000e+00> : vector<8xf32>
    %14 = vector.multi_reduction <add>, %12, %cst_6 [1] : vector<8x384xf32> to vector<8xf32>
    %15 = vector.shape_cast %14 : vector<8xf32> to vector<8x1xf32>
    %16 = arith.addf %13, %15 : vector<8x1xf32>
    %c0_7 = arith.constant 0 : index
    %c0_8 = arith.constant 0 : index
    %17 = vector.load %arg6[%c0_7, %c0_8] : memref<8x1xf32, #tpu.memory_space<vmem>>, vector<8x1xf32>
    tpu.vector_store %arg6[%c0_7, %c0_8], %16 {strides = array<i32>} : memref<8x1xf32, #tpu.memory_space<vmem>>, vector<8x1xf32>,
    %c0_i32_9 = arith.constant 0 : i32
    %18 = arith.cmpi eq, %arg1, %c0_i32_9 : i32
    %19 = arith.extui %18 : i1 to i32
    %c0_i32_10 = arith.constant 0 : i32
    %20 = arith.cmpi ne, %19, %c0_i32_10 : i32
    scf.if %20 {
      %c0_11 = arith.constant 0 : index
      %c0_12 = arith.constant 0 : index
      %21 = vector.load %arg4[%c0_11, %c0_12] : memref<8x1xf32, #tpu.memory_space<vmem>>, vector<8x1xf32>
      %c0_13 = arith.constant 0 : index
      %c0_14 = arith.constant 0 : index
      %22 = vector.load %arg6[%c0_13, %c0_14] : memref<8x1xf32, #tpu.memory_space<vmem>>, vector<8x1xf32>
      %cst_15 = arith.constant 0.000000e+00 : f32
      %23 = vector.broadcast %cst_15 : f32 to vector<8x1xf32>
      %24 = arith.subf %23, %22 : vector<8x1xf32>
      %25 = arith.mulf %24, %21 : vector<8x1xf32>
      %26 = vector.shape_cast %25 : vector<8x1xf32> to vector<1x8x1xf32>
      %cst_16 = arith.constant dense<0.000000e+00> : vector<1xf32>
      %27 = vector.multi_reduction <add>, %26, %cst_16 [1, 2] : vector<1x8x1xf32> to vector<1xf32>
      %28 = vector.shape_cast %27 : vector<1xf32> to vector<1x1x1xf32>
      %29 = vector.extract %28[0, 0, 0] : f32 from vector<1x1x1xf32>
      %30 = vector.broadcast %29 : f32 to vector<8x128xf32>
      %c0_17 = arith.constant 0 : index
      %c0_18 = arith.constant 0 : index
      %31 = vector.load %arg5[%c0_17, %c0_18] : memref<8x128xf32, #tpu.memory_space<vmem>>, vector<8x128xf32>
      tpu.vector_store %arg5[%c0_17, %c0_18], %30 {strides = array<i32>} : memref<8x128xf32, #tpu.memory_space<vmem>>, vector<8x128xf32>,
    } else {
    }
    return
  }
  func.func @transform_0(%arg0: i32, %arg1: i32) -> (i32, i32) {
    %c0_i32 = arith.constant 0 : i32
    return %arg0, %arg1 : i32, i32
  }
  func.func @transform_1(%arg0: i32, %arg1: i32) -> (i32, i32) {
    %c0_i32 = arith.constant 0 : i32
    %c0_i32_0 = arith.constant 0 : i32
    return %arg0, %c0_i32 : i32, i32
  }
  func.func @transform_2(%arg0: i32, %arg1: i32) -> (i32, i32) {
    %c0_i32 = arith.constant 0 : i32
    %c0_i32_0 = arith.constant 0 : i32
    return %arg0, %c0_i32 : i32, i32
  }
  func.func @transform_3(%arg0: i32, %arg1: i32) -> (i32, i32) {
    %c0_i32 = arith.constant 0 : i32
    %c0_i32_0 = arith.constant 0 : i32
    return %arg0, %c0_i32 : i32, i32
  }
}

</mosaic_0001>

<bundles_post_ra>
// kernel: tpu_custom_call.1
= control target key start
LH: loop header
LB: loop body
LE: loop exit
PB: predicated region body
PF: predicated region fallthrough
CT: control target
= control target key end

     0   :  { %8 = vsyncpa [#allocation4], 0  ;;  %s766_s0 = inlined_call_operand.hbm [shape: f32[18,384], index: 0, kind: input, shape index: {}]   ;;  %s767_s1 = inlined_call_operand.vmem [shape: s32[24,1], index: 1, kind: input, shape index: {}]   ;;  %s768_s2 = inlined_call_operand.vmem [shape: f32[24,1], index: 2, kind: input, shape index: {}]   ;;  %s769_s3 = inlined_call_operand.hbm [shape: f32[24,128], index: 3, kind: output, shape index: {}]  }
   0x1   :  { %10 = vsyncpa [#allocation4 + $0x1], 0 }
   0x2   :  { %11 = vsyncpa [#allocation5], 0 }
   0x3   :  { %13 = vsyncpa [#allocation5 + $0x1], 0  ;;  %s633_s12 = smov 0   ;;  %s635_s13 = smov 0  }
   0x4   :  { %s637_s14 = smov 0   ;;  %s639_s15 = smov 0  }
   0x5   :  { %s641_s16 = smov 0   ;;  %s643_s17 = smov 0  }
   0x6 LB: > { %s414_s18 = sadd.s32 4294967295, %s609_s17   ;;  %s415_s19 = sadd.s32 4294967294, %s609_s17   ;;  %s609_s17 = sphi %s643_s17, %s19_s17   ;;  %s605_s16 = sphi %s641_s16, %s778_s16   ;;  %s601_s15 = sphi %s639_s15, %s777_s15   ;;  %s597_s14 = sphi %s637_s14, %s776_s14   ;;  %s593_s13 = sphi %s635_s13, %s775_s13   ;;  %s589_s12 = sphi %s633_s12, %s774_s12  }
   0x7   : > { %s31_s20 = sadd.s32 1, %s605_s16  ;;  %s40_s21 = sadd.s32 1, %s597_s14 }
   0x8   : > { %p33_p0 = scmp.ge.s32.totalorder %s31_s20, 3  ;;  %p47_p1 = scmp.ne.s32.totalorder %s597_s14, %s593_s13 }
   0x9   : > { %p48_p2 = scmp.eq.s32.totalorder %s609_s17, 0  ;;  %p53_p3 = scmp.ne.s32.totalorder %s593_s13, %s589_s12 }
   0xa   : > { %s780_s20 = smov (%p33_p0, %s31_s20), 0  ;;  %p54_p5 = scmp.eq.s32.totalorder %s414_s18, 0 }
   0xb   : > { %p674_p4 = por %p48_p2, %p47_p1  ;;  %s35_s23 = ssub.s32 %s605_s16, %s780_s20 }
   0xc   : > { %p129_p6 = scmp.eq.s32.totalorder %s414_s18, 2  ;;  %p38_p7 = scmp.eq.s32.totalorder %s35_s23, 0 }
   0xd   : > { %p680_p8 = por %p54_p5, %p53_p3  ;;  %p135_p10 = scmp.eq.s32.totalorder %s415_s19, 2 }
   0xe   : > { %p684_p9 = por %p129_p6, %p47_p1  ;;  %p444_p12 = scmp.lt.s32.totalorder %s609_s17, 3 }
   0xf   : > { %s689_s26 = scalar_select %p38_p7, %s597_s14, %s40_s21  }
  0x10   : > { %p691_p11 = por %p135_p10, %p53_p3  ;;  %s155_s28 = sand.u32 1, %s597_s14  }
  0x11   : > { %s427_s29 = smul.u32 24, %s155_s28  ;;  %p437_p13 = pnand %p444_p12, %p674_p4 }
  0x12   : > { %s428_s30 = smul.u32 24, %s605_s16  ;;  %p419_p0 = scmp.ge.s32.totalorder %s609_s17, 1 }
  0x13   : > { %s159_s7 = scalar_lea.vmem [#allocation3], %s427_s29  ;;  %s156_s10 = scalar_lea.sflag [#allocation4], %s155_s28 }
  0x14   : > { %s166_s6 = scalar_lea.hbm %s766_s0, %s428_s30  ;;  %s170_s8 = sshll.u32 %s159_s7, 4  ;;  %s171_s8 = int_to_ptr.vmem [resolvable:$true] %s170_s8 }
  0x15   : > { %s168_s9 = sshll.u32 %s166_s6, 4  ;;  %p189_p1 = scmp.lt.s32.totalorder %s609_s17, 4  ;;  %s169_s9 = int_to_ptr.hbm [resolvable:$true] %s168_s9 }
  0x16   : > { %439 = dma.hbm_to_vmem [thread:$0]  (!%p437_p13), %s169_s9, 384, %s171_s8, %s156_s10  }
  0x17   : > { %p190_p2 = pnand %p419_p0, %p189_p1 }
  0x18   : > { %s706_s11 = sand.u32 (!%p190_p2), 1, %s593_s13  }
  0x19   : > { %193 = sbr.rel (%p190_p2) target bundleno = 472 (0x1d8), region = 32  ;;  %s196_s19 = scalar_lea.sflag (!%p190_p2), [#allocation4], %s706_s11 }
  0x1a   : > { %s429_s18 = smul.u32 (!%p190_p2), 24, %s706_s11 }
  0x1c   : > { %s199_s21 = scalar_lea.vmem (!%p190_p2), [#allocation3], %s429_s18 }
  0x1e   : > { %580 = dma.done.wait (%p680_p8), %s196_s19, 384  }
  0x1f   : > { %582 = vsyncadd (%p680_p8), %s196_s19, 4294966912  ;;  %p232_p3 = scmp.lt.s32.totalorder %s601_s15, 2  ;;  %v611_v0 = vmov 0   ;;  %vm244_vm0 = vcmask 7168   ;;  %v612_v2 = vmov 0.0   ;;  %v253_v3 = vlaneseq  ;;  %v246_v7 = vld [vmem:[%s199_s21] sm:$0xff] }
  0x20   : > { %496 = vset.pattern.permute.xlu0 %v611_v0  ;;  %245 = vst.msk [vmem:[#allocation2] sm:$0xff] %vm244_vm0, %v612_v2  ;;  %v247_v8 = vld [vmem:[%s199_s21 + $0x8] sm:$0xff]  ;;  %v248_v10 = vld [vmem:[%s199_s21 + $0x10] sm:$0xff]  ;;  %s420_s6 = sshll.u32 %s706_s11, 3  ;;  %s424_s7 = sshll.u32 %s601_s15, 3 }
  0x21   : > { %s716_s22 = scalar_select %p232_p3, %s601_s15, 2  ;;  %v254_v4 = vand.u32 127, %v253_v3 }
  0x22   : > { %s304_s10 = scalar_lea.hbm %s769_s3, %s424_s7  ;;  %s230_s18 = scalar_lea.vmem [#allocation6], %s420_s6 }
  0x23   : > { %s421_s23 = sshll.u32 %s716_s22, 3  ;;  %v255_v5 = vadd.s32 128, %v254_v4  ;;  %v256_v6 = vadd.s32 256, %v254_v4  ;;  %s306_s19 = sshll.u32 %s230_s18, 4  ;;  %s307_s19 = int_to_ptr.vmem [resolvable:$true] %s306_s19 }
  0x24   : > { %s235_s30 = scalar_lea.vmem %s767_s1, %s421_s23  ;;  %s239_s5 = scalar_lea.vmem %s768_s2, %s421_s23 }
  0x25   : > { %v249_v1 = vld [vmem:[%s235_s30] sm:$0xff]  ;;  %s308_s21 = sshll.u32 %s304_s10, 4  ;;  %s294_s23 = scalar_lea.sflag [#allocation5], %s706_s11  ;;  %s309_s21 = int_to_ptr.hbm [resolvable:$true] %s308_s21 }
  0x26   : > { %258 = vperm.xlu0 %496, %v249_v1   ;;  %v277_v19 = vld [vmem:[%s239_s5] sm:$0xff]  ;;  %s541_s28 = sshra.s32 %s309_s21, 4  ;;  %s547_s24 = scalar_lea.hbm %s769_s3, 24  ;;  %s542_s28 = int_to_ptr.hbm [resolvable:$true] %s541_s28 }
  0x27   : > { %v266_v16 = vld [vmem:[#allocation2] sm:$0xff]  ;;  %s543_s29 = scalar_lea.hbm %s542_s28, 8  ;;  %p548_p7 = scmp.lt.s32.totalorder %s542_s28, %s769_s3 }
  0x28   : > { %p544_p4 = scmp.ne.s32.totalorder %s542_s28, %s543_s29  ;;  %p549_p8 = scmp.lt.s32.totalorder %s547_s24, %s543_s29 }
  0x2a   : > { %p545_p5 = pnand %p544_p4, %p684_p9  ;;  %p550_p10 = por %p549_p8, %p548_p7 }
  0x2c   : > { %p546_p6 = pneg %p545_p5 }
  0x2e   : > { %p551_p12 = pnand %p550_p10, %p546_p6 }
  0x98   : > { %v259_v9 = vpop.permute.xlu0 %258 }
  0x99   : > { %vm260_vm1 = vcmp.eq.s32.totalorder %v254_v4, %v259_v9  ;;  %vm261_vm2 = vcmp.eq.s32.totalorder %v255_v5, %v259_v9  ;;  %vm262_vm3 = vcmp.eq.s32.totalorder %v256_v6, %v259_v9 }
  0x9a   : > { %v263_v11 = vsel %vm260_vm1, %v246_v7, 0.0  ;;  %v264_v12 = vsel %vm261_vm2, %v247_v8, 0.0  ;;  %v265_v14 = vsel %vm262_vm3, %v248_v10, 0.0 }
  0x9b   : > { %v267_v13 = vadd.f32 %v264_v12, %v263_v11 }
  0x9d   : > { %v268_v15 = vadd.f32 %v267_v13, %v265_v14 }
  0x9f   : > { %269 = vadd.xlane.f32.xlu0 %v268_v15 }
 0x112   : > { %v270_v17 = vpop.xlane.xlu0 %269 }
 0x113   : > { %v271_v18 = vadd.f32 %v270_v17, %v266_v16 }
 0x115   : > { %273 = vst.msk [vmem:[#allocation2] sm:$0xff] %vm244_vm0, %v271_v18 }
 0x11c   : > { %v278_v20 = vld [vmem:[#allocation2] sm:$0xff] }
 0x11d   : > { %v279_v21 = vsub.f32 0.0, %v278_v20 }
 0x11f   : > { %v280_v22 = vmul.f32 %v279_v21, %v277_v19 }
 0x121   : > { %v281_v23 = vsel %vm244_vm0, %v280_v22, 0.0 }
 0x122   : > { %282 = vadd.xlane.f32.xlu1 %v281_v23 }
 0x195   : > { %v283_v24 = vpop.xlane.xlu1 %282 }
 0x196   : > { %v284_v25 = vrot.slane %v283_v24, 4 }
 0x198   : > { %v285_v26 = vadd.f32 %v284_v25, %v283_v24 }
 0x19a   : > { %v286_v27 = vrot.slane %v285_v26, 2 }
 0x19c   : > { %v287_v28 = vadd.f32 %v286_v27, %v285_v26 }
 0x19e   : > { %v288_v29 = vrot.slane %v287_v28, 1 }
 0x1a0   : > { %v289_v30 = vadd.f32 %v288_v29, %v287_v28 }
 0x1a2   : > { %430 = vpush %v289_v30 }
 0x1d3   : > { %s431_s22 = spop %430 }
 0x1d4   : > { %v291_v31 = vstv %s431_s22 }
 0x1d5   : > { %292 = vst [vmem:[%s230_s18] sm:$0xff] %v291_v31 }
 0x1d6   : > { %554 = shalt.err (!%p551_p12)
}
 0x1d7   : > { %434 = dma.vmem_to_hbm [thread:$0]  (%p684_p9), %s307_s19, 128, %s309_s21, %s294_s23  }
 0x1d8 PF: > { %p445_p13 = scmp.ge.s32.totalorder %s609_s17, 2  ;;  %s320_s11 = sand.u32 1, %s589_s12  }
 0x1d9   : > { %s321_s6 = scalar_lea.sflag [#allocation5], %s320_s11 }
 0x1da   : > { %p441_p0 = pnand %p445_p13, %p691_p11 }
 0x1dc   : > { %p442_p1 = pneg %p441_p0 }
 0x1de   : > { %584 = dma.done.wait (%p442_p1), %s321_s6, 128  }
 0x1df   : > { %586 = vsyncadd (%p442_p1), %s321_s6, 4294967168  ;;  %s19_s17 = sadd.s32 1, %s609_s17   ;;  %s774_s12 = smov %s593_s13 }
 0x1e0   : > { %p16_p2 = scmp.ge.s32.totalorder %s19_s17, 5   ;;  %s775_s13 = smov %s597_s14 }
 0x1e1   : > { %s776_s14 = smov %s689_s26  ;;  %s777_s15 = smov %s605_s16 }
 0x1e2   : > { %s778_s16 = smov %s780_s20  ;;  %18 = sbr.rel (!%p16_p2) target bundleno = 6 (0x6), region = 91 }
 0x1e7   :  { %327 = vsyncpa [#allocation4], 1 }
 0x1e8   :  { %329 = vsyncpa [#allocation4 + $0x1], 1 }
 0x1e9   :  { %330 = vsyncpa [#allocation5], 1 }
 0x1ea   :  { %332 = vsyncpa [#allocation5 + $0x1], 1 }

</bundles_post_ra>
